<compile_context>
chip_gen: v6e
topology: v6e:2x2x1
jax: 0.10.0
libtpu: 0.0.40
codegen_flags: <defaults>
</compile_context>

<pallas_src>
import math

import jax
import jax.numpy as jnp
from jax.experimental import pallas as pl
from jax.experimental.pallas import tpu as pltpu

# ---- static configuration -------------------------------------------------
B = 8              # batch (example)
D = 32             # inputs_dim (hidden features)
MAX_USERS = 4      # number of Categorical heads (MultiDiscrete dims)
N_SC = 8           # actions per Categorical head (n_sc)
A_CONT = 4         # Box action dim (DiagGaussian head)
SC_CAP = 2.0       # metadata['sc_capacity']
NOISE_EPS = 0.1    # metadata['noise_epsilon']
NOISE_SCALE = 0.1  # metadata['noise_scale']
NEG_INF = -1e10    # Categorical masking value (logits[mask==0] = -1e10)
_LOG_SQRT_2PI = 0.5 * math.log(2.0 * math.pi)   # plain Python float (no capture)

DISC_W = MAX_USERS * N_SC          # 32  discrete logit columns
HEAD_W = DISC_W + A_CONT           # 36  live matmul output width
NOISE_W = 2 * MAX_USERS + A_CONT   # 12  [ru | ra | rn]
OUT_W = MAX_USERS + A_CONT + 1     # 9   actions || logp
OUT_PAD = 128                      # lane-dense width for weights / bias / output


# ---- Pallas kernel ----------------------------------------------------------
def mixed_act_kernel(x_ref, w_ref, b_ref, noise_ref, out_ref):
    bsz = x_ref.shape[0]
    x = x_ref[...]                                               # (bsz, D)
    b = b_ref[...]                                               # (1, OUT_PAD)
    noise = noise_ref[...]                                       # (bsz, NOISE_W)

    # Single lane-dense MXU matmul for all heads: (bsz,D)@(D,128) + (1,128).
    heads = jnp.dot(x, w_ref[...], preferred_element_type=jnp.float32) + b
    mean = heads[:, DISC_W:HEAD_W]                               # (bsz, A_CONT)
    logstd = b[:, HEAD_W:HEAD_W + A_CONT]                        # (1, A_CONT)

    ru = noise[:, :MAX_USERS]                                    # U(0,1) epsilon draws
    ra = noise[:, MAX_USERS:2 * MAX_USERS]                       # random actions (float)
    rn = noise[:, 2 * MAX_USERS:]                                # N(0,1) Gaussian noise

    sc_stat = jnp.zeros((bsz, N_SC), jnp.float32)                # subchannel load counter
    prod_sumexp = jnp.ones((bsz, 1), jnp.float32)                # running prod of sum-exps
    col = jax.lax.broadcasted_iota(jnp.int32, (bsz, N_SC), 1)    # lane index grid

    acts = []
    # Sequential per-user decisions (data-dependent mask recurrence), unrolled.
    for u in range(MAX_USERS):
        logits = heads[:, u * N_SC:(u + 1) * N_SC]               # (bsz, N_SC)
        act_mask = sc_stat < SC_CAP
        ml = jnp.where(act_mask, logits, NEG_INF)                # masked logits

        # mode(): argmax over last axis (first occurrence on ties)
        m = jnp.max(ml, axis=-1, keepdims=True)                  # (bsz, 1)
        is_max = ml >= m
        action = jnp.min(jnp.where(is_max, col, N_SC),
                         axis=-1, keepdims=True)                 # (bsz,1) int32

        # log_probs(mode): m - lse == -log(sum exp(ml - m)); accumulate as a
        # product (each factor in [1, N_SC]) and take ONE log at the end.
        prod_sumexp = prod_sumexp * jnp.sum(jnp.exp(ml - m), axis=-1, keepdims=True)

        # add_maddpg_noise (Categorical): epsilon-greedy random replacement
        rmask = (ru[:, u:u + 1] < NOISE_EPS).astype(jnp.float32)
        act_f = rmask * ra[:, u:u + 1] + (1.0 - rmask) * action.astype(jnp.float32)
        acts.append(act_f)

        # sc_stat[b, action[b]] += 1   (scatter-add via one-hot compare)
        sc_stat = sc_stat + (col == act_f.astype(jnp.int32)).astype(jnp.float32)

    disc_logp = -jnp.log(prod_sumexp)                            # (bsz, 1)

    # Continuous DiagGaussian head: deterministic => mode()==mean, Normal noise,
    # log_probs evaluated at the post-noise action (matches torch ordering).
    inv_var = jnp.exp(-2.0 * logstd)                             # (1, A_CONT)
    cont = mean + rn * NOISE_SCALE
    lp_c = -0.5 * ((cont - mean) ** 2) * inv_var - logstd - _LOG_SQRT_2PI
    total_logp = disc_logp + jnp.sum(lp_c, axis=-1, keepdims=True)

    # Single lane-padded store: [disc actions | cont action | logp | zeros]
    out = jnp.concatenate(acts + [cont, total_logp], axis=-1)    # (bsz, OUT_W)
    pad = jnp.zeros((bsz, OUT_PAD - OUT_W), jnp.float32)
    out_ref[...] = jnp.concatenate([out, pad], axis=-1)


# ---- builder: one-time parameter packing + jitted forward -------------------
def make_mixed_act_forward(wd, bd, wc, bc, logstd, *, block_b=None):
    """Pack parameters ONCE into lane-dense slabs; return a jitted forward.

    block_b=None  -> gridless call (whole batch resident in VMEM).
    block_b=TB    -> grid over batch blocks with "parallel" semantics
                     (v7x megacore splits the grid across TensorCores).
    """
    w_fused = jnp.zeros((D, OUT_PAD), jnp.float32)
    w_fused = w_fused.at[:, :DISC_W].set(wd)
    w_fused = w_fused.at[:, DISC_W:HEAD_W].set(wc)
    b_fused = jnp.zeros((1, OUT_PAD), jnp.float32)
    b_fused = b_fused.at[:, :DISC_W].set(bd)
    b_fused = b_fused.at[:, DISC_W:HEAD_W].set(bc)
    b_fused = b_fused.at[:, HEAD_W:HEAD_W + A_CONT].set(logstd)

    def forward(x, noise):
        batch = x.shape[0]
        cost = pl.CostEstimate(
            flops=2 * batch * D * HEAD_W,
            transcendentals=batch * (DISC_W + A_CONT + 2),
            bytes_accessed=4 * (batch * D + D * OUT_PAD + OUT_PAD
                                + batch * NOISE_W + batch * OUT_PAD))
        out_shape = jax.ShapeDtypeStruct((batch, OUT_PAD), jnp.float32)

        if block_b is None or block_b >= batch:
            # Gridless: full arrays in VMEM, no pipelining loop / double buffers.
            vmem = pl.BlockSpec(memory_space=pltpu.MemorySpace.VMEM)
            call = pl.pallas_call(
                mixed_act_kernel,
                out_shape=out_shape,
                in_specs=[vmem, vmem, vmem, vmem],
                out_specs=vmem,
                cost_estimate=cost)
        else:
            assert batch % block_b == 0, "batch must be divisible by block_b"
            # TODO(synk): at production batch sizes, transposing so batch maps to
            # lanes would raise VPU/XLU lane occupancy on the per-user recurrence.
            call = pl.pallas_call(
                mixed_act_kernel,
                out_shape=out_shape,
                grid=(batch // block_b,),
                in_specs=[
                    pl.BlockSpec((block_b, D), lambda i: (i, 0)),
                    pl.BlockSpec((D, OUT_PAD), lambda i: (0, 0)),
                    pl.BlockSpec((1, OUT_PAD), lambda i: (0, 0)),
                    pl.BlockSpec((block_b, NOISE_W), lambda i: (i, 0)),
                ],
                out_specs=pl.BlockSpec((block_b, OUT_PAD), lambda i: (i, 0)),
                compiler_params=pltpu.CompilerParams(
                    dimension_semantics=("parallel",)),
                cost_estimate=cost)

        out = call(x, w_fused, b_fused, noise)
        actions = out[:, :MAX_USERS + A_CONT]
        logp = out[:, MAX_USERS + A_CONT:MAX_USERS + A_CONT + 1]
        return actions, logp

    return jax.jit(forward)


# ---- pure-JAX reference (mirrors the PyTorch forward) ------------------------
def reference(x, wd, bd, wc, bc, logstd, noise):
    bsz = x.shape[0]
    ru = noise[:, :MAX_USERS]
    ra = noise[:, MAX_USERS:2 * MAX_USERS]
    rn = noise[:, 2 * MAX_USERS:]
    logits_all = x @ wd + bd
    sc_stat = jnp.zeros((bsz, N_SC), jnp.float32)
    disc_logp = jnp.zeros((bsz, 1), jnp.float32)
    col = jnp.arange(N_SC)[None, :]
    acts = []
    for u in range(MAX_USERS):
        logits = logits_all[:, u * N_SC:(u + 1) * N_SC]
        ml = jnp.where(sc_stat < SC_CAP, logits, NEG_INF)
        action = jnp.argmax(ml, axis=-1, keepdims=True)
        lse = jax.scipy.special.logsumexp(ml, axis=-1, keepdims=True)
        disc_logp = disc_logp + (jnp.max(ml, -1, keepdims=True) - lse)
        rmask = (ru[:, u:u + 1] < NOISE_EPS).astype(jnp.float32)
        act_f = rmask * ra[:, u:u + 1] + (1.0 - rmask) * action.astype(jnp.float32)
        acts.append(act_f)
        sc_stat = sc_stat + (col == act_f.astype(jnp.int32)).astype(jnp.float32)
    mean = x @ wc + bc
    std = jnp.exp(logstd)
    cont = mean + rn * NOISE_SCALE
    lp_c = (-((cont - mean) ** 2) / (2.0 * std * std)) - logstd - _LOG_SQRT_2PI
    acts.append(cont)
    return jnp.concatenate(acts, -1), disc_logp + jnp.sum(lp_c, -1, keepdims=True)


if __name__ == "__main__":
    key = jax.random.PRNGKey(0)
    (kx, kw1, kw2, ku, ka, kn,
     kx2, ku2, ka2, kn2) = jax.random.split(key, 10)

    # deterministic parameter init (synthetic; biases/logstd zero like nn.Linear/AddBias)
    x = jax.random.normal(kx, (B, D), jnp.float32)
    wd = jax.random.normal(kw1, (D, DISC_W), jnp.float32) * 0.5
    bd = jnp.zeros((1, DISC_W), jnp.float32)
    wc = jax.random.normal(kw2, (D, A_CONT), jnp.float32) * 0.5
    bc = jnp.zeros((1, A_CONT), jnp.float32)
    logstd = jnp.zeros((1, A_CONT), jnp.float32)

    # maddpg noise packed ONCE at the RNG site into a single (B, 12) slab
    noise = jnp.concatenate([
        jax.random.uniform(ku, (B, MAX_USERS), jnp.float32),
        jax.random.randint(ka, (B, MAX_USERS), 0, N_SC).astype(jnp.float32),
        jax.random.normal(kn, (B, A_CONT), jnp.float32)], axis=-1)

    # --- small-batch, gridless path ------------------------------------------
    forward = make_mixed_act_forward(wd, bd, wc, bc, logstd)   # one-time packing
    actions, logp = forward(x, noise)
    jax.block_until_ready((actions, logp))

    ref_a, ref_lp = reference(x, wd, bd, wc, bc, logstd, noise)
    assert actions.shape == (B, MAX_USERS + A_CONT) and logp.shape == (B, 1)
    assert jnp.allclose(actions, ref_a, atol=1e-3), "actions mismatch"
    assert jnp.allclose(logp, ref_lp, atol=1e-3), "log_prob mismatch"

    # --- fused multi-agent batch, parallel grid (megacore) path ---------------
    BB = 256
    xb = jax.random.normal(kx2, (BB, D), jnp.float32)
    noise_b = jnp.concatenate([
        jax.random.uniform(ku2, (BB, MAX_USERS), jnp.float32),
        jax.random.randint(ka2, (BB, MAX_USERS), 0, N_SC).astype(jnp.float32),
        jax.random.normal(kn2, (BB, A_CONT), jnp.float32)], axis=-1)
    forward_b = make_mixed_act_forward(wd, bd, wc, bc, logstd, block_b=128)
    actions_b, logp_b = forward_b(xb, noise_b)
    jax.block_until_ready((actions_b, logp_b))
    ref_ab, ref_lpb = reference(xb, wd, bd, wc, bc, logstd, noise_b)
    assert jnp.allclose(actions_b, ref_ab, atol=1e-3), "batched actions mismatch"
    assert jnp.allclose(logp_b, ref_lpb, atol=1e-3), "batched log_prob mismatch"

    # TODO(synk): the exact DiagGaussian(inputs_dim, action_dim, act_space) variant
    # (possible Box-bound scaling) is not in the provided source; standard MAPPO
    # DiagGaussian (linear mean + zero logstd bias) is implemented here.
    print("KERNEL_OK")
</pallas_src>

<mosaic_0001>
module attributes {stable_mosaic.version = 11 : i64} {
  func.func @mixed_act_kernel(%arg0: memref<8x32xf32, #tpu.memory_space<vmem>>, %arg1: memref<32x128xf32, #tpu.memory_space<vmem>>, %arg2: memref<1x128xf32, #tpu.memory_space<vmem>>, %arg3: memref<8x12xf32, #tpu.memory_space<vmem>>, %arg4: memref<8x128xf32, #tpu.memory_space<vmem>>) attributes {dimension_semantics = [], scalar_prefetch = 0 : i64, scratch_operands = 0 : i64, tpu.core_type = #tpu.core_type<tc>} {
    %c0 = arith.constant 0 : index
    %c0_0 = arith.constant 0 : index
    %0 = vector.load %arg0[%c0, %c0_0] : memref<8x32xf32, #tpu.memory_space<vmem>>, vector<8x32xf32>
    %c0_1 = arith.constant 0 : index
    %c0_2 = arith.constant 0 : index
    %1 = vector.load %arg2[%c0_1, %c0_2] : memref<1x128xf32, #tpu.memory_space<vmem>>, vector<1x128xf32>
    %c0_3 = arith.constant 0 : index
    %c0_4 = arith.constant 0 : index
    %2 = vector.load %arg3[%c0_3, %c0_4] : memref<8x12xf32, #tpu.memory_space<vmem>>, vector<8x12xf32>
    %c0_5 = arith.constant 0 : index
    %c0_6 = arith.constant 0 : index
    %3 = vector.load %arg1[%c0_5, %c0_6] : memref<32x128xf32, #tpu.memory_space<vmem>>, vector<32x128xf32>
    %cst = arith.constant dense<0.000000e+00> : vector<8x128xf32>
    %4 = tpu.matmul %0, %3, %cst {dimension_numbers = #tpu.dot_dimension_numbers<[1], [0], [0], [1], [0, 0, 1, 1], [], []>} : vector<8x32xf32>, vector<32x128xf32>, vector<8x128xf32> -> vector<8x128xf32>
    %5 = vector.broadcast %1 : vector<1x128xf32> to vector<8x128xf32>
    %6 = arith.addf %4, %5 : vector<8x128xf32>
    %7 = vector.extract_strided_slice %6 {offsets = [0, 32], sizes = [8, 4], strides = [1, 1]} : vector<8x128xf32> to vector<8x4xf32>
    %8 = vector.extract_strided_slice %1 {offsets = [0, 36], sizes = [1, 4], strides = [1, 1]} : vector<1x128xf32> to vector<1x4xf32>
    %9 = vector.extract_strided_slice %2 {offsets = [0, 0], sizes = [8, 4], strides = [1, 1]} : vector<8x12xf32> to vector<8x4xf32>
    %10 = vector.extract_strided_slice %2 {offsets = [0, 4], sizes = [8, 4], strides = [1, 1]} : vector<8x12xf32> to vector<8x4xf32>
    %11 = vector.extract_strided_slice %2 {offsets = [0, 8], sizes = [8, 4], strides = [1, 1]} : vector<8x12xf32> to vector<8x4xf32>
    %cst_7 = arith.constant 0.000000e+00 : f32
    %12 = vector.broadcast %cst_7 : f32 to vector<8x8xf32>
    %cst_8 = arith.constant 1.000000e+00 : f32
    %13 = vector.broadcast %cst_8 : f32 to vector<8x1xf32>
    %14 = tpu.iota {dimensions = array<i32: 1>} : vector<8x8xi32>
    %15 = vector.extract_strided_slice %6 {offsets = [0, 0], sizes = [8, 8], strides = [1, 1]} : vector<8x128xf32> to vector<8x8xf32>
    %cst_9 = arith.constant 2.000000e+00 : f32
    %16 = vector.broadcast %cst_9 : f32 to vector<8x8xf32>
    %17 = arith.cmpf olt, %12, %16 : vector<8x8xf32>
    %cst_10 = arith.constant -1.000000e+10 : f32
    %18 = vector.broadcast %cst_10 : f32 to vector<8x8xf32>
    %19 = arith.select %17, %15, %18 : vector<8x8xi1>, vector<8x8xf32>
    %cst_11 = arith.constant dense<0xFF800000> : vector<8xf32>
    %20 = vector.multi_reduction <maximumf>, %19, %cst_11 [1] : vector<8x8xf32> to vector<8xf32>
    %21 = vector.shape_cast %20 : vector<8xf32> to vector<8x1xf32>
    %22 = vector.broadcast %21 : vector<8x1xf32> to vector<8x8xf32>
    %23 = arith.cmpf oge, %19, %22 : vector<8x8xf32>
    %c8_i32 = arith.constant 8 : i32
    %24 = vector.broadcast %c8_i32 : i32 to vector<8x8xi32>
    %25 = arith.select %23, %14, %24 : vector<8x8xi1>, vector<8x8xi32>
    %cst_12 = arith.constant dense<2147483647> : vector<8xi32>
    %26 = vector.multi_reduction <minsi>, %25, %cst_12 [1] : vector<8x8xi32> to vector<8xi32>
    %27 = vector.shape_cast %26 : vector<8xi32> to vector<8x1xi32>
    %28 = vector.broadcast %21 : vector<8x1xf32> to vector<8x8xf32>
    %29 = arith.subf %19, %28 : vector<8x8xf32>
    %30 = math.exp %29 : vector<8x8xf32>
    %cst_13 = arith.constant dense<0.000000e+00> : vector<8xf32>
    %31 = vector.multi_reduction <add>, %30, %cst_13 [1] : vector<8x8xf32> to vector<8xf32>
    %32 = vector.shape_cast %31 : vector<8xf32> to vector<8x1xf32>
    %33 = arith.mulf %13, %32 : vector<8x1xf32>
    %34 = vector.extract_strided_slice %9 {offsets = [0, 0], sizes = [8, 1], strides = [1, 1]} : vector<8x4xf32> to vector<8x1xf32>
    %cst_14 = arith.constant 1.000000e-01 : f32
    %35 = vector.broadcast %cst_14 : f32 to vector<8x1xf32>
    %36 = arith.cmpf olt, %34, %35 : vector<8x1xf32>
    %37 = arith.extui %36 : vector<8x1xi1> to vector<8x1xi32>
    %38 = arith.sitofp %37 : vector<8x1xi32> to vector<8x1xf32>
    %39 = vector.extract_strided_slice %10 {offsets = [0, 0], sizes = [8, 1], strides = [1, 1]} : vector<8x4xf32> to vector<8x1xf32>
    %40 = arith.mulf %38, %39 : vector<8x1xf32>
    %cst_15 = arith.constant 1.000000e+00 : f32
    %41 = vector.broadcast %cst_15 : f32 to vector<8x1xf32>
    %42 = arith.subf %41, %38 : vector<8x1xf32>
    %43 = arith.sitofp %27 : vector<8x1xi32> to vector<8x1xf32>
    %44 = arith.mulf %42, %43 : vector<8x1xf32>
    %45 = arith.addf %40, %44 : vector<8x1xf32>
    %46 = arith.fptosi %45 : vector<8x1xf32> to vector<8x1xi32>
    %47 = vector.broadcast %46 : vector<8x1xi32> to vector<8x8xi32>
    %48 = arith.cmpi eq, %14, %47 : vector<8x8xi32>
    %49 = arith.extui %48 : vector<8x8xi1> to vector<8x8xi32>
    %50 = arith.sitofp %49 : vector<8x8xi32> to vector<8x8xf32>
    %51 = arith.addf %12, %50 : vector<8x8xf32>
    %52 = vector.extract_strided_slice %6 {offsets = [0, 8], sizes = [8, 8], strides = [1, 1]} : vector<8x128xf32> to vector<8x8xf32>
    %cst_16 = arith.constant 2.000000e+00 : f32
    %53 = vector.broadcast %cst_16 : f32 to vector<8x8xf32>
    %54 = arith.cmpf olt, %51, %53 : vector<8x8xf32>
    %cst_17 = arith.constant -1.000000e+10 : f32
    %55 = vector.broadcast %cst_17 : f32 to vector<8x8xf32>
    %56 = arith.select %54, %52, %55 : vector<8x8xi1>, vector<8x8xf32>
    %cst_18 = arith.constant dense<0xFF800000> : vector<8xf32>
    %57 = vector.multi_reduction <maximumf>, %56, %cst_18 [1] : vector<8x8xf32> to vector<8xf32>
    %58 = vector.shape_cast %57 : vector<8xf32> to vector<8x1xf32>
    %59 = vector.broadcast %58 : vector<8x1xf32> to vector<8x8xf32>
    %60 = arith.cmpf oge, %56, %59 : vector<8x8xf32>
    %c8_i32_19 = arith.constant 8 : i32
    %61 = vector.broadcast %c8_i32_19 : i32 to vector<8x8xi32>
    %62 = arith.select %60, %14, %61 : vector<8x8xi1>, vector<8x8xi32>
    %cst_20 = arith.constant dense<2147483647> : vector<8xi32>
    %63 = vector.multi_reduction <minsi>, %62, %cst_20 [1] : vector<8x8xi32> to vector<8xi32>
    %64 = vector.shape_cast %63 : vector<8xi32> to vector<8x1xi32>
    %65 = vector.broadcast %58 : vector<8x1xf32> to vector<8x8xf32>
    %66 = arith.subf %56, %65 : vector<8x8xf32>
    %67 = math.exp %66 : vector<8x8xf32>
    %cst_21 = arith.constant dense<0.000000e+00> : vector<8xf32>
    %68 = vector.multi_reduction <add>, %67, %cst_21 [1] : vector<8x8xf32> to vector<8xf32>
    %69 = vector.shape_cast %68 : vector<8xf32> to vector<8x1xf32>
    %70 = arith.mulf %33, %69 : vector<8x1xf32>
    %71 = vector.extract_strided_slice %9 {offsets = [0, 1], sizes = [8, 1], strides = [1, 1]} : vector<8x4xf32> to vector<8x1xf32>
    %cst_22 = arith.constant 1.000000e-01 : f32
    %72 = vector.broadcast %cst_22 : f32 to vector<8x1xf32>
    %73 = arith.cmpf olt, %71, %72 : vector<8x1xf32>
    %74 = arith.extui %73 : vector<8x1xi1> to vector<8x1xi32>
    %75 = arith.sitofp %74 : vector<8x1xi32> to vector<8x1xf32>
    %76 = vector.extract_strided_slice %10 {offsets = [0, 1], sizes = [8, 1], strides = [1, 1]} : vector<8x4xf32> to vector<8x1xf32>
    %77 = arith.mulf %75, %76 : vector<8x1xf32>
    %cst_23 = arith.constant 1.000000e+00 : f32
    %78 = vector.broadcast %cst_23 : f32 to vector<8x1xf32>
    %79 = arith.subf %78, %75 : vector<8x1xf32>
    %80 = arith.sitofp %64 : vector<8x1xi32> to vector<8x1xf32>
    %81 = arith.mulf %79, %80 : vector<8x1xf32>
    %82 = arith.addf %77, %81 : vector<8x1xf32>
    %83 = arith.fptosi %82 : vector<8x1xf32> to vector<8x1xi32>
    %84 = vector.broadcast %83 : vector<8x1xi32> to vector<8x8xi32>
    %85 = arith.cmpi eq, %14, %84 : vector<8x8xi32>
    %86 = arith.extui %85 : vector<8x8xi1> to vector<8x8xi32>
    %87 = arith.sitofp %86 : vector<8x8xi32> to vector<8x8xf32>
    %88 = arith.addf %51, %87 : vector<8x8xf32>
    %89 = vector.extract_strided_slice %6 {offsets = [0, 16], sizes = [8, 8], strides = [1, 1]} : vector<8x128xf32> to vector<8x8xf32>
    %cst_24 = arith.constant 2.000000e+00 : f32
    %90 = vector.broadcast %cst_24 : f32 to vector<8x8xf32>
    %91 = arith.cmpf olt, %88, %90 : vector<8x8xf32>
    %cst_25 = arith.constant -1.000000e+10 : f32
    %92 = vector.broadcast %cst_25 : f32 to vector<8x8xf32>
    %93 = arith.select %91, %89, %92 : vector<8x8xi1>, vector<8x8xf32>
    %cst_26 = arith.constant dense<0xFF800000> : vector<8xf32>
    %94 = vector.multi_reduction <maximumf>, %93, %cst_26 [1] : vector<8x8xf32> to vector<8xf32>
    %95 = vector.shape_cast %94 : vector<8xf32> to vector<8x1xf32>
    %96 = vector.broadcast %95 : vector<8x1xf32> to vector<8x8xf32>
    %97 = arith.cmpf oge, %93, %96 : vector<8x8xf32>
    %c8_i32_27 = arith.constant 8 : i32
    %98 = vector.broadcast %c8_i32_27 : i32 to vector<8x8xi32>
    %99 = arith.select %97, %14, %98 : vector<8x8xi1>, vector<8x8xi32>
    %cst_28 = arith.constant dense<2147483647> : vector<8xi32>
    %100 = vector.multi_reduction <minsi>, %99, %cst_28 [1] : vector<8x8xi32> to vector<8xi32>
    %101 = vector.shape_cast %100 : vector<8xi32> to vector<8x1xi32>
    %102 = vector.broadcast %95 : vector<8x1xf32> to vector<8x8xf32>
    %103 = arith.subf %93, %102 : vector<8x8xf32>
    %104 = math.exp %103 : vector<8x8xf32>
    %cst_29 = arith.constant dense<0.000000e+00> : vector<8xf32>
    %105 = vector.multi_reduction <add>, %104, %cst_29 [1] : vector<8x8xf32> to vector<8xf32>
    %106 = vector.shape_cast %105 : vector<8xf32> to vector<8x1xf32>
    %107 = arith.mulf %70, %106 : vector<8x1xf32>
    %108 = vector.extract_strided_slice %9 {offsets = [0, 2], sizes = [8, 1], strides = [1, 1]} : vector<8x4xf32> to vector<8x1xf32>
    %cst_30 = arith.constant 1.000000e-01 : f32
    %109 = vector.broadcast %cst_30 : f32 to vector<8x1xf32>
    %110 = arith.cmpf olt, %108, %109 : vector<8x1xf32>
    %111 = arith.extui %110 : vector<8x1xi1> to vector<8x1xi32>
    %112 = arith.sitofp %111 : vector<8x1xi32> to vector<8x1xf32>
    %113 = vector.extract_strided_slice %10 {offsets = [0, 2], sizes = [8, 1], strides = [1, 1]} : vector<8x4xf32> to vector<8x1xf32>
    %114 = arith.mulf %112, %113 : vector<8x1xf32>
    %cst_31 = arith.constant 1.000000e+00 : f32
    %115 = vector.broadcast %cst_31 : f32 to vector<8x1xf32>
    %116 = arith.subf %115, %112 : vector<8x1xf32>
    %117 = arith.sitofp %101 : vector<8x1xi32> to vector<8x1xf32>
    %118 = arith.mulf %116, %117 : vector<8x1xf32>
    %119 = arith.addf %114, %118 : vector<8x1xf32>
    %120 = arith.fptosi %119 : vector<8x1xf32> to vector<8x1xi32>
    %121 = vector.broadcast %120 : vector<8x1xi32> to vector<8x8xi32>
    %122 = arith.cmpi eq, %14, %121 : vector<8x8xi32>
    %123 = arith.extui %122 : vector<8x8xi1> to vector<8x8xi32>
    %124 = arith.sitofp %123 : vector<8x8xi32> to vector<8x8xf32>
    %125 = arith.addf %88, %124 : vector<8x8xf32>
    %126 = vector.extract_strided_slice %6 {offsets = [0, 24], sizes = [8, 8], strides = [1, 1]} : vector<8x128xf32> to vector<8x8xf32>
    %cst_32 = arith.constant 2.000000e+00 : f32
    %127 = vector.broadcast %cst_32 : f32 to vector<8x8xf32>
    %128 = arith.cmpf olt, %125, %127 : vector<8x8xf32>
    %cst_33 = arith.constant -1.000000e+10 : f32
    %129 = vector.broadcast %cst_33 : f32 to vector<8x8xf32>
    %130 = arith.select %128, %126, %129 : vector<8x8xi1>, vector<8x8xf32>
    %cst_34 = arith.constant dense<0xFF800000> : vector<8xf32>
    %131 = vector.multi_reduction <maximumf>, %130, %cst_34 [1] : vector<8x8xf32> to vector<8xf32>
    %132 = vector.shape_cast %131 : vector<8xf32> to vector<8x1xf32>
    %133 = vector.broadcast %132 : vector<8x1xf32> to vector<8x8xf32>
    %134 = arith.cmpf oge, %130, %133 : vector<8x8xf32>
    %c8_i32_35 = arith.constant 8 : i32
    %135 = vector.broadcast %c8_i32_35 : i32 to vector<8x8xi32>
    %136 = arith.select %134, %14, %135 : vector<8x8xi1>, vector<8x8xi32>
    %cst_36 = arith.constant dense<2147483647> : vector<8xi32>
    %137 = vector.multi_reduction <minsi>, %136, %cst_36 [1] : vector<8x8xi32> to vector<8xi32>
    %138 = vector.shape_cast %137 : vector<8xi32> to vector<8x1xi32>
    %139 = vector.broadcast %132 : vector<8x1xf32> to vector<8x8xf32>
    %140 = arith.subf %130, %139 : vector<8x8xf32>
    %141 = math.exp %140 : vector<8x8xf32>
    %cst_37 = arith.constant dense<0.000000e+00> : vector<8xf32>
    %142 = vector.multi_reduction <add>, %141, %cst_37 [1] : vector<8x8xf32> to vector<8xf32>
    %143 = vector.shape_cast %142 : vector<8xf32> to vector<8x1xf32>
    %144 = arith.mulf %107, %143 : vector<8x1xf32>
    %145 = vector.extract_strided_slice %9 {offsets = [0, 3], sizes = [8, 1], strides = [1, 1]} : vector<8x4xf32> to vector<8x1xf32>
    %cst_38 = arith.constant 1.000000e-01 : f32
    %146 = vector.broadcast %cst_38 : f32 to vector<8x1xf32>
    %147 = arith.cmpf olt, %145, %146 : vector<8x1xf32>
    %148 = arith.extui %147 : vector<8x1xi1> to vector<8x1xi32>
    %149 = arith.sitofp %148 : vector<8x1xi32> to vector<8x1xf32>
    %150 = vector.extract_strided_slice %10 {offsets = [0, 3], sizes = [8, 1], strides = [1, 1]} : vector<8x4xf32> to vector<8x1xf32>
    %151 = arith.mulf %149, %150 : vector<8x1xf32>
    %cst_39 = arith.constant 1.000000e+00 : f32
    %152 = vector.broadcast %cst_39 : f32 to vector<8x1xf32>
    %153 = arith.subf %152, %149 : vector<8x1xf32>
    %154 = arith.sitofp %138 : vector<8x1xi32> to vector<8x1xf32>
    %155 = arith.mulf %153, %154 : vector<8x1xf32>
    %156 = arith.addf %151, %155 : vector<8x1xf32>
    %157 = math.log %144 : vector<8x1xf32>
    %cst_40 = arith.constant 0.000000e+00 : f32
    %158 = vector.broadcast %cst_40 : f32 to vector<8x1xf32>
    %159 = arith.subf %158, %157 : vector<8x1xf32>
    %cst_41 = arith.constant -2.000000e+00 : f32
    %160 = vector.broadcast %cst_41 : f32 to vector<1x4xf32>
    %161 = arith.mulf %160, %8 : vector<1x4xf32>
    %162 = math.exp %161 : vector<1x4xf32>
    %cst_42 = arith.constant 1.000000e-01 : f32
    %163 = vector.broadcast %cst_42 : f32 to vector<8x4xf32>
    %164 = arith.mulf %11, %163 : vector<8x4xf32>
    %165 = arith.addf %7, %164 : vector<8x4xf32>
    %166 = arith.subf %165, %7 : vector<8x4xf32>
    %167 = arith.mulf %166, %166 : vector<8x4xf32>
    %cst_43 = arith.constant -5.000000e-01 : f32
    %168 = vector.broadcast %cst_43 : f32 to vector<8x4xf32>
    %169 = arith.mulf %168, %167 : vector<8x4xf32>
    %170 = vector.broadcast %162 : vector<1x4xf32> to vector<8x4xf32>
    %171 = arith.mulf %169, %170 : vector<8x4xf32>
    %172 = vector.broadcast %8 : vector<1x4xf32> to vector<8x4xf32>
    %173 = arith.subf %171, %172 : vector<8x4xf32>
    %cst_44 = arith.constant 0.918938517 : f32
    %174 = vector.broadcast %cst_44 : f32 to vector<8x4xf32>
    %175 = arith.subf %173, %174 : vector<8x4xf32>
    %cst_45 = arith.constant dense<0.000000e+00> : vector<8xf32>
    %176 = vector.multi_reduction <add>, %175, %cst_45 [1] : vector<8x4xf32> to vector<8xf32>
    %177 = vector.shape_cast %176 : vector<8xf32> to vector<8x1xf32>
    %178 = arith.addf %159, %177 : vector<8x1xf32>
    %179 = tpu.concatenate %45, %82, %119, %156, %165, %178 in 1 : vector<8x1xf32>, vector<8x1xf32>, vector<8x1xf32>, vector<8x1xf32>, vector<8x4xf32>, vector<8x1xf32> -> vector<8x9xf32>
    %cst_46 = arith.constant 0.000000e+00 : f32
    %180 = vector.broadcast %cst_46 : f32 to vector<8x119xf32>
    %181 = tpu.concatenate %179, %180 in 1 : vector<8x9xf32>, vector<8x119xf32> -> vector<8x128xf32>
    %c0_47 = arith.constant 0 : index
    %c0_48 = arith.constant 0 : index
    %182 = vector.load %arg4[%c0_47, %c0_48] : memref<8x128xf32, #tpu.memory_space<vmem>>, vector<8x128xf32>
    tpu.vector_store %arg4[%c0_47, %c0_48], %181 {strides = array<i32>} : memref<8x128xf32, #tpu.memory_space<vmem>>, vector<8x128xf32>,
    return
  }
}

</mosaic_0001>

<bundles_post_ra>
// kernel: forward.1
= control target key start
LH: loop header
LB: loop body
LE: loop exit
PB: predicated region body
PF: predicated region fallthrough
CT: control target
= control target key end

     0   :  { %9 = vsyncpa [#allocation3], 0  ;;  %s661_s0 = inlined_call_operand.hbm [shape: f32[8,32], index: 0, kind: input, shape index: {}]   ;;  %s662_s1 = inlined_call_operand.hbm [shape: f32[32,128], index: 1, kind: input, shape index: {}]   ;;  %s663_s2 = inlined_call_operand.vmem [shape: f32[1,128], index: 2, kind: input, shape index: {}]   ;;  %s664_s3 = inlined_call_operand.hbm [shape: f32[8,12], index: 3, kind: input, shape index: {}]   ;;  %s665_s4 = inlined_call_operand.vmem [shape: f32[8,128], index: 4, kind: output, shape index: {}]  }
   0x1   :  { %10 = vsyncpa [#allocation5], 0  ;;  %s497_s15 = smov [#allocation4]  }
   0x2   :  { %s26_s16 = sshll.u32 %s497_s15, 4  ;;  %s27_s16 = int_to_ptr.vmem [resolvable:$true] %s26_s16 }
   0x3   :  { %s441_s17 = scalar_lea.vmem %s27_s16, 512  ;;  %p446_p1 = scmp.lt.s32.totalorder %s27_s16, %s27_s16 }
   0x4   :  { %p442_p0 = scmp.ne.s32.totalorder %s27_s16, %s441_s17  ;;  %p447_p2 = scmp.lt.s32.totalorder %s441_s17, %s441_s17 }
   0x6   :  { %p448_p3 = por %p447_p2, %p446_p1 }
   0x8   :  { %p449_p4 = pnand %p448_p3, %p442_p0 }
   0xa   :  { %452 = shalt.err (!%p449_p4)
}
   0xb   :  { %s498_s18 = smov 128   ;;  %s499_s19 = smov 8  }
   0xc   :  { %32 = dma.hbm_to_vmem [thread:$0]  %s662_s1, 512, %s27_s16, [#allocation5], %s498_s18, %s498_s18, %s499_s19  }
   0xd   :  { %s500_s22 = smov [#allocation2]   ;;  %s501_s24 = smov [#allocation6]  }
   0xe   :  { %s17_s23 = sshll.u32 %s500_s22, 4  ;;  %s41_s25 = sshll.u32 %s501_s24, 4  ;;  %s18_s23 = int_to_ptr.vmem [resolvable:$true] %s17_s23  ;;  %s42_s25 = int_to_ptr.vmem [resolvable:$true] %s41_s25 }
   0xf   :  { %s461_s26 = scalar_lea.vmem %s18_s23, 128  ;;  %p466_p6 = scmp.lt.s32.totalorder %s18_s23, %s18_s23 }
  0x10   :  { %p462_p5 = scmp.ne.s32.totalorder %s18_s23, %s461_s26  ;;  %p467_p7 = scmp.lt.s32.totalorder %s461_s26, %s461_s26 }
  0x12   :  { %p468_p8 = por %p467_p7, %p466_p6 }
  0x14   :  { %p469_p9 = pnand %p468_p8, %p462_p5 }
  0x16   :  { %472 = shalt.err (!%p469_p9)
}
  0x17   :  { %20 = dma.hbm_to_vmem [thread:$0]  %s661_s0, 128, %s18_s23, [#allocation3]  }
  0x18   :  { %s481_s29 = scalar_lea.vmem %s42_s25, 128  ;;  %p486_p11 = scmp.lt.s32.totalorder %s42_s25, %s42_s25 }
  0x19   :  { %p482_p10 = scmp.ne.s32.totalorder %s42_s25, %s481_s29  ;;  %p487_p12 = scmp.lt.s32.totalorder %s481_s29, %s481_s29 }
  0x1b   :  { %p488_p13 = por %p487_p12, %p486_p11 }
  0x1d   :  { %p489_p0 = pnand %p488_p13, %p482_p10 }
  0x1f   :  { %492 = shalt.err (!%p489_p0)
}
  0x20   :  { %44 = dma.hbm_to_vmem [thread:$0]  %s664_s3, 128, %s42_s25, [#allocation5]  }
  0x21   :  { %493 = dma.done.wait [#allocation3], 128  }
  0x22   :  { %494 = vsyncadd [#allocation3], 4294967168 }
  0x23   :  { %495 = dma.done.wait [#allocation5], 640  }
  0x24   :  { %496 = vsyncadd [#allocation5], 4294966656  ;;  %v502_v0 = vmov 0.0   ;;  %vm503_vm0 = vmmov 0   ;;  %v60_v1 = vld [vmem:[#allocation4 + $0x18] sm:$0xff]  ;;  %v59_v2 = vld [vmem:[#allocation4 + $0x10] sm:$0xff]  ;;  %v62_v6 = vlaneseq }
  0x25   :  { %384 = vmatprep.subr.mxu0 %v502_v0  ;;  %392 = vmatprep.mubr.msk.f32.mxu0 %vm503_vm0, %v502_v0  ;;  %v58_v3 = vld [vmem:[#allocation4 + $0x8] sm:$0xff]  ;;  %v57_v4 = vld [vmem:[#allocation4] sm:$0xff]  ;;  %v54_v5 = vld [vmem:[#allocation2] sm:$0xff]  ;;  %vm67_vm1 = vcmask 261120   ;;  %vm145_vm2 = vcmask 64512   ;;  %v505_v26 = vmov 0  }
  0x26   :  { %385 = vmatpush3.msra.mxu0 %v60_v1  ;;  %v553_v7 = vshrl.u32 %v62_v6, 7  ;;  %v559_v9 = vld [vmem:[%s663_s2] sm:$0x1]  ;;  %v571_v15 = vand.u32 127, %v62_v6  ;;  %v579_v25 = vld [vmem:[#allocation6] sm:$0xff]  ;;  %s504_s2 = smov 124   ;;  %418 = vset.pattern.permute.xlu0 %v505_v26 }
  0x27   :  { %386 = vmatprep.subr.mxu0 %v502_v0  ;;  %s506_s5 = smov 120   ;;  %vm172_vm5 = vcmp.lt.f32.partialorder %v579_v25, 0.1  ;;  %v507_v55 = vmov 1   ;;  %s508_s6 = smov 112   ;;  %vm356_vm14 = vcmask 7168  }
  0x28   :  { %387 = vmatpush3.msra.mxu0 %v59_v2  ;;  %v64_v8 = vsub.s32 0, %v553_v7  ;;  %v374_v29 = vsel %vm172_vm5, 1.0, %v502_v0  ;;  %419 = vset.pattern.permute.xlu1 %v507_v55  ;;  %s509_s7 = smov 104   ;;  %s510_s8 = smov 24   ;;  %vm358_vm15 = vcmask 15360  }
  0x29   :  { %388 = vmatprep.subr.mxu0 %v502_v0  ;;  %v586_v33 = vsub.f32 1.0, %v374_v29  ;;  %s512_s9 = smov 96   ;;  %s513_s10 = smov 100  }
  0x2a   :  { %389 = vmatpush3.msra.mxu0 %v58_v3  ;;  %v564_v10 = vrot.slane %v559_v9, %v64_v8 }
  0x2b   :  { %390 = vmatprep.subr.mxu0 %v502_v0 }
  0x2c   :  { %391 = vmatpush3.msra.mxu0 %v57_v4 }
  0x2d   :  { %393 = vmatmul.mubr.msk.f32.vlgmr.msra.gmra.mxu0 %vm67_vm1, %v54_v5 }
  0xed   :  { %v137_v11 = vpop.f32.mrf.mxu0 }
  0xee   :  { %v567_v12 = vadd.f32 %v137_v11, %v564_v10 }
  0xef   :  { %v394_v13 = vpop.f32.mrf.mxu0 }
  0xf0   :  { %v146_v14 = vsel %vm145_vm2, %v567_v12, -inf }
  0xf1   :  { %147 = vmax.xlane.f32.xlu0 %v146_v14 }
 0x17a   :  { %v573_v16 = vpop.xlane.xlu0 %147 }
 0x17b   :  { %vm149_vm3 = vcmp.ge.f32.partialorder %v567_v12, %v573_v16 }
 0x17c   :  { %v150_v17 = vsel %vm149_vm3, %v571_v15, 8 }
 0x17d   :  { %v151_v18 = vsel %vm145_vm2, %v150_v17, 2147483647 }
 0x17e   :  { %v153_v19 = vshra.s32 %v151_v18, 16  ;;  %v152_v21 = vand.u32 65535, %v151_v18 }
 0x180   :  { %v155_v20 = vcvt.s32.f32 %v153_v19  ;;  %v154_v23 = vcvt.s32.f32 %v152_v21 }
 0x182   :  { %156 = vmin.xlane.f32.xlu0 %v155_v20 }
 0x20b   :  { %v157_v22 = vpop.xlane.xlu0 %156 }
 0x20c   :  { %vm158_vm4 = vcmp.eq.f32.partialorder %v155_v20, %v157_v22  ;;  %v163_v27 = vcvt.f32.s32 %v157_v22  ;;  %v317_v20 = vmul.f32 -2.0, %v559_v9 }
 0x20d   :  { %v159_v24 = vsel %vm158_vm4, %v154_v23, inf  ;;  %v320_v23 = vmul.f32 0.1, %v579_v25  ;;  %vm347_vm4 = vcmask 31744  }
 0x20e   :  { %160 = vmin.xlane.f32.xlu1 %v159_v24  ;;  %v164_v30 = vshll.u32 %v163_v27, 16  ;;  %v318_v22 = vmul.f32 1.442695, %v317_v20 }
 0x210   :  { %421 = vpow2.f32 %v318_v22 }
 0x21d   :  { %v422_v24 = vpop.eup %421 }
 0x21e   :  { %v333_v26 = vrot.slane %v422_v24, %v64_v8 }
 0x21f   :  { %176 = vrot.lane.b32.xlu1 %v579_v25, %s504_s2 }
 0x223   :  { %194 = vrot.lane.b32.xlu1 %v567_v12, %s506_s5 }
 0x297   :  { %v161_v28 = vpop.xlane.xlu1 %160 }
 0x298   :  { %v162_v31 = vcvt.f32.s32 %v161_v28 }
 0x29a   :  { %v165_v32 = vadd.s32 %v164_v30, %v162_v31  ;;  %v511_v30 = vmov 2  }
 0x29b   :  { %v177_v34 = vpop.permute.xlu1 %176 }
 0x29c   :  { %v181_v35 = vcvt.s32.f32 %v165_v32  ;;  %v588_v36 = vmul.f32 %v374_v29, %v177_v34 }
 0x29e   :  { %v182_v37 = vmul.f32 %v181_v35, %v586_v33 }
 0x29f   :  { %v195_v43 = vpop.permute.xlu1 %194 }
 0x2a0   :  { %v592_v38 = vadd.f32 %v182_v37, %v588_v36 }
 0x2a2   :  { %v395_v39 = vtrunc.f32 %v592_v38 }
 0x2a4   :  { %v396_v40 = vcvt.f32.s32 %v395_v39 }
 0x2a6   :  { %186 = vperm.xlu0 %418, %v396_v40  }
 0x2aa   :  { %420 = vset.pattern.permute.xlu0 %v511_v30 }
 0x321   :  { %v187_v41 = vpop.permute.xlu0 %186 }
 0x322   :  { %vm188_vm6 = vcmp.eq.s32.totalorder %v571_v15, %v187_v41 }
 0x323   :  { %v375_v42 = vsel %vm188_vm6, 1.0, %v502_v0  ;;  %vm360_vm6 = vcmask 23552  }
 0x324   :  { %vm192_vm7 = vcmp.lt.f32.partialorder %v375_v42, 2.0 }
 0x325   :  { %v597_v44 = vsel %vm192_vm7, %v195_v43, -1e+10  ;;  %vm364_vm7 = vcmask 72704  }
 0x326   :  { %v198_v45 = vsel %vm145_vm2, %v597_v44, -inf }
 0x327   :  { %199 = vmax.xlane.f32.xlu1 %v198_v45 }
 0x3b0   :  { %v601_v46 = vpop.xlane.xlu1 %199 }
 0x3b1   :  { %vm201_vm8 = vcmp.ge.f32.partialorder %v597_v44, %v601_v46 }
 0x3b2   :  { %v202_v47 = vsel %vm201_vm8, %v571_v15, 8 }
 0x3b3   :  { %v203_v48 = vsel %vm145_vm2, %v202_v47, 2147483647 }
 0x3b4   :  { %v205_v49 = vshra.s32 %v203_v48, 16  ;;  %v204_v51 = vand.u32 65535, %v203_v48 }
 0x3b6   :  { %v207_v50 = vcvt.s32.f32 %v205_v49  ;;  %v206_v53 = vcvt.s32.f32 %v204_v51 }
 0x3b8   :  { %208 = vmin.xlane.f32.xlu0 %v207_v50 }
 0x441   :  { %v209_v52 = vpop.xlane.xlu0 %208 }
 0x442   :  { %vm210_vm9 = vcmp.eq.f32.partialorder %v207_v50, %v209_v52  ;;  %v215_v56 = vcvt.f32.s32 %v209_v52 }
 0x443   :  { %v211_v54 = vsel %vm210_vm9, %v206_v53, inf }
 0x444   :  { %212 = vmin.xlane.f32.xlu1 %v211_v54  ;;  %v216_v58 = vshll.u32 %v215_v56, 16 }
 0x4cd   :  { %v213_v57 = vpop.xlane.xlu1 %212 }
 0x4ce   :  { %v214_v59 = vcvt.f32.s32 %v213_v57 }
 0x4d0   :  { %v217_v60 = vadd.s32 %v216_v58, %v214_v59 }
 0x4d2   :  { %v225_v61 = vcvt.s32.f32 %v217_v60 }
 0x4d4   :  { %v226_v62 = vmul.f32 %v225_v61, %v586_v33 }
 0x4d6   :  { %v227_v63 = vadd.f32 %v226_v62, %v588_v36  ;;  %v166_v62 = vsub.f32 %v567_v12, %v573_v16 }
 0x4d8   :  { %v397_v1 = vtrunc.f32 %v227_v63  ;;  %v357_v37 = vsel %vm356_vm14, %v592_v38, %v227_v63  ;;  %v167_v63 = vmul.f32 1.442695, %v166_v62 }
 0x4da   :  { %v398_v2 = vcvt.f32.s32 %v397_v1 }
 0x4dc   :  { %230 = vperm.xlu1 %419, %v398_v2  }
 0x4e0   :  { %237 = vrot.lane.b32.xlu1 %v567_v12, %s508_s6 }
 0x557   :  { %v231_v3 = vpop.permute.xlu1 %230 }
 0x558   :  { %vm232_vm10 = vcmp.eq.s32.totalorder %v571_v15, %v231_v3 }
 0x559   :  { %v376_v4 = vsel %vm232_vm10, 1.0, %v502_v0 }
 0x55a   :  { %v235_v5 = vadd.f32 %v376_v4, %v375_v42 }
 0x55b   :  { %v238_v6 = vpop.permute.xlu1 %237 }
 0x55c   :  { %vm236_vm11 = vcmp.lt.f32.partialorder %v235_v5, 2.0 }
 0x55d   :  { %v612_v11 = vsel %vm236_vm11, %v238_v6, -1e+10 }
 0x55e   :  { %v241_v13 = vsel %vm145_vm2, %v612_v11, -inf }
 0x55f   :  { %242 = vmax.xlane.f32.xlu0 %v241_v13 }
 0x5e8   :  { %v616_v14 = vpop.xlane.xlu0 %242 }
 0x5e9   :  { %vm244_vm12 = vcmp.ge.f32.partialorder %v612_v11, %v616_v14  ;;  %v261_v1 = vsub.f32 %v612_v11, %v616_v14 }
 0x5ea   :  { %v245_v17 = vsel %vm244_vm12, %v571_v15, 8 }
 0x5eb   :  { %v246_v18 = vsel %vm145_vm2, %v245_v17, 2147483647  ;;  %v262_v2 = vmul.f32 1.442695, %v261_v1 }
 0x5ec   :  { %v248_v19 = vshra.s32 %v246_v18, 16  ;;  %v247_v9 = vand.u32 65535, %v246_v18 }
 0x5ee   :  { %v250_v21 = vcvt.s32.f32 %v248_v19  ;;  %v249_v28 = vcvt.s32.f32 %v247_v9 }
 0x5f0   :  { %251 = vmin.xlane.f32.xlu1 %v250_v21 }
 0x601   :  { %280 = vrot.lane.b32.xlu1 %v567_v12, %s509_s7 }
 0x605   :  { %322 = vrot.lane.b32.xlu1 %v320_v23, %s510_s8 }
 0x609   :  { %334 = vrot.lane.b32.xlu1 %v333_v26, %s504_s2 }
 0x60d   :  { %338 = vrot.lane.b32.xlu1 %v564_v10, %s504_s2 }
 0x679   :  { %v252_v27 = vpop.xlane.xlu1 %251 }
 0x67a   :  { %vm253_vm13 = vcmp.eq.f32.partialorder %v250_v21, %v252_v27  ;;  %v258_v25 = vcvt.f32.s32 %v252_v27 }
 0x67b   :  { %v254_v29 = vsel %vm253_vm13, %v249_v28, inf }
 0x67c   :  { %255 = vmin.xlane.f32.xlu0 %v254_v29  ;;  %v259_v32 = vshll.u32 %v258_v25, 16 }
 0x67d   :  { %v281_v42 = vpop.permute.xlu1 %280 }
 0x681   :  { %v323_v45 = vpop.permute.xlu1 %322 }
 0x682   :  { %v325_v49 = vadd.f32 %v323_v45, %v567_v12 }
 0x684   :  { %v326_v38 = vsub.f32 %v325_v49, %v567_v12 }
 0x685   :  { %v335_v53 = vpop.permute.xlu1 %334 }
 0x686   :  { %v327_v52 = vmul.f32 %v326_v38, %v326_v38 }
 0x688   :  { %v328_v54 = vmul.f32 -0.5, %v327_v52 }
 0x689   :  { %v339_v56 = vpop.permute.xlu1 %338 }
 0x68a   :  { %v337_v55 = vmul.f32 %v335_v53, %v328_v54 }
 0x68c   :  { %v341_v57 = vsub.f32 %v337_v55, %v339_v56 }
 0x68e   :  { %v378_v58 = vadd.f32 -0.9189385, %v341_v57 }
 0x705   :  { %v256_v31 = vpop.xlane.xlu0 %255 }
 0x706   :  { %v257_v34 = vcvt.f32.s32 %v256_v31 }
 0x708   :  { %v260_v35 = vadd.s32 %v259_v32, %v257_v34 }
 0x70a   :  { %v268_v7 = vcvt.s32.f32 %v260_v35 }
 0x70c   :  { %v269_v8 = vmul.f32 %v268_v7, %v586_v33 }
 0x70e   :  { %v270_v10 = vadd.f32 %v269_v8, %v588_v36 }
 0x710   :  { %v399_v39 = vtrunc.f32 %v270_v10  ;;  %v633_v40 = vsel %vm358_vm15, %v357_v37, %v270_v10 }
 0x712   :  { %v400_v41 = vcvt.f32.s32 %v399_v39 }
 0x714   :  { %273 = vperm.xlu0 %420, %v400_v41  }
 0x78f   :  { %v274_v43 = vpop.permute.xlu0 %273 }
 0x790   :  { %vm275_vm0 = vcmp.eq.s32.totalorder %v571_v15, %v274_v43 }
 0x791   :  { %v377_v47 = vsel %vm275_vm0, 1.0, %v502_v0  ;;  %v218_v0 = vsub.f32 %v597_v44, %v601_v46 }
 0x792   :  { %v278_v48 = vadd.f32 %v377_v47, %v235_v5 }
 0x793   :  { %v219_v59 = vmul.f32 1.442695, %v218_v0 }
 0x794   :  { %vm279_vm1 = vcmp.lt.f32.partialorder %v278_v48, 2.0 }
 0x795   :  { %v283_v50 = vsel %vm279_vm1, %v281_v42, -1e+10  ;;  %423 = vpow2.f32 %v219_v59 }
 0x796   :  { %v284_v51 = vsel %vm145_vm2, %v283_v50, -inf  ;;  %425 = vpow2.f32 %v167_v63 }
 0x797   :  { %285 = vmax.xlane.f32.xlu0 %v284_v51  ;;  %427 = vpow2.f32 %v262_v2 }
 0x7a2   :  { %v424_v60 = vpop.eup %423 }
 0x7a3   :  { %v221_v61 = vsel %vm145_vm2, %v424_v60, 0.0  ;;  %v426_v17 = vpop.eup %425 }
 0x7a4   :  { %v169_v12 = vsel %vm145_vm2, %v426_v17, 0.0  ;;  %v428_v16 = vpop.eup %427 }
 0x7a5   :  { %v264_v11 = vsel %vm145_vm2, %v428_v16, 0.0 }
 0x7ad   :  { %344 = vrot.lane.b32.xlu0 %v378_v58, %s512_s9 }
 0x7cc   :  { %222 = vadd.xlane.f32.xlu0 %v221_v61 }
 0x820   :  { %v286_v3 = vpop.xlane.xlu0 %285 }
 0x821   :  { %vm287_vm3 = vcmp.ge.f32.partialorder %v283_v50, %v286_v3  ;;  %v304_v4 = vsub.f32 %v283_v50, %v286_v3 }
 0x822   :  { %v288_v44 = vsel %vm287_vm3, %v571_v15, 8 }
 0x823   :  { %v305_v46 = vmul.f32 1.442695, %v304_v4  ;;  %v289_v5 = vsel %vm145_vm2, %v288_v44, 2147483647 }
 0x824   :  { %v291_v6 = vshra.s32 %v289_v5, 16  ;;  %v345_v14 = vpop.permute.xlu0 %344  ;;  %v290_v20 = vand.u32 65535, %v289_v5 }
 0x825   :  { %429 = vpow2.f32 %v305_v46  ;;  %v348_v18 = vsel %vm347_vm4, %v345_v14, 0.0 }
 0x826   :  { %v293_v13 = vcvt.s32.f32 %v291_v6  ;;  %v292_v22 = vcvt.s32.f32 %v290_v20 }
 0x828   :  { %294 = vmin.xlane.f32.xlu1 %v293_v13 }
 0x82c   :  { %170 = vadd.xlane.f32.xlu1 %v169_v12 }
 0x830   :  { %265 = vadd.xlane.f32.xlu1 %v264_v11 }
 0x832   :  { %v430_v15 = vpop.eup %429 }
 0x833   :  { %v307_v19 = vsel %vm145_vm2, %v430_v15, 0.0 }
 0x834   :  { %349 = vadd.xlane.f32.xlu1 %v348_v18 }
 0x838   :  { %308 = vadd.xlane.f32.xlu1 %v307_v19 }
 0x855   :  { %v223_v27 = vpop.xlane.xlu0 %222 }
 0x8b1   :  { %v295_v21 = vpop.xlane.xlu1 %294 }
 0x8b2   :  { %vm296_vm5 = vcmp.eq.f32.partialorder %v293_v13, %v295_v21  ;;  %v301_v31 = vcvt.f32.s32 %v295_v21 }
 0x8b3   :  { %v297_v23 = vsel %vm296_vm5, %v292_v22, inf }
 0x8b4   :  { %298 = vmin.xlane.f32.xlu1 %v297_v23  ;;  %v302_v35 = vshll.u32 %v301_v31, 16 }
 0x8b5   :  { %v171_v24 = vpop.xlane.xlu1 %170 }
 0x8b6   :  { %v224_v28 = vmul.f32 %v223_v27, %v171_v24 }
 0x8b9   :  { %v266_v26 = vpop.xlane.xlu1 %265 }
 0x8ba   :  { %v267_v30 = vmul.f32 %v266_v26, %v224_v28 }
 0x8bd   :  { %v350_v9 = vpop.xlane.xlu1 %349 }
 0x8c1   :  { %v309_v29 = vpop.xlane.xlu1 %308 }
 0x8c2   :  { %v310_v25 = vmul.f32 %v309_v29, %v267_v30 }
 0x8c4   :  { %431 = vlog2.f32 %v310_v25 }
 0x8c5   :  { %353 = vrot.lane.b32.xlu1 %v325_v49, %s513_s10 }
 0x8d1   :  { %v432_v32 = vpop.eup %431 }
 0x8d2   :  { %v315_v8 = vmul.f32 0.6931472, %v432_v32 }
 0x8d4   :  { %v316_v39 = vsub.f32 0.0, %v315_v8 }
 0x8d6   :  { %v351_v43 = vadd.f32 %v350_v9, %v316_v39 }
 0x93d   :  { %v299_v34 = vpop.xlane.xlu1 %298 }
 0x93e   :  { %v300_v7 = vcvt.f32.s32 %v299_v34 }
 0x940   :  { %v303_v10 = vadd.s32 %v302_v35, %v300_v7 }
 0x941   :  { %v354_v47 = vpop.permute.xlu1 %353 }
 0x942   :  { %v311_v37 = vcvt.s32.f32 %v303_v10 }
 0x944   :  { %v312_v41 = vmul.f32 %v311_v37, %v586_v33 }
 0x946   :  { %v313_v42 = vadd.f32 %v312_v41, %v588_v36 }
 0x948   :  { %v361_v45 = vsel %vm360_vm6, %v633_v40, %v313_v42 }
 0x949   :  { %v362_v48 = vsel %vm347_vm4, %v361_v45, %v354_v47 }
 0x94a   :  { %v363_v49 = vsel %vm145_vm2, %v362_v48, %v351_v43 }
 0x94b   :  { %v365_v50 = vsel %vm364_vm7, %v363_v49, 0.0 }
 0x94c   :  { %366 = vst [vmem:[%s665_s4] sm:$0xff] %v365_v50 }
 0x94d   :  { %371 = vsyncpa [#allocation3], 1 }
 0x94e   :  { %372 = vsyncpa [#allocation5], 1 }

</bundles_post_ra>
